<compile_context>
chip_gen: v7x
topology: tpu7x:2x2x1
jax: 0.10.0
libtpu: 0.0.40
codegen_flags: <defaults>
</compile_context>

<pallas_src>
import functools

import jax
import jax.numpy as jnp
from jax import lax
from jax.experimental import pallas as pl
from jax.experimental.pallas import tpu as pltpu


def _silu(x):
    return x * jax.nn.sigmoid(x)


def _layernorm(x, g, b, inv_d):
    # x is zero-padded along the last dim.  Sums over padded lanes are exact
    # (pads are zero) and var = E[x^2] - mu^2 keeps the statistics correct.
    mu = jnp.sum(x, axis=-1, keepdims=True) * inv_d
    ex2 = jnp.sum(x * x, axis=-1, keepdims=True) * inv_d
    var = jnp.maximum(ex2 - mu * mu, 0.0)
    y = (x - mu) * lax.rsqrt(var + 1e-5)
    # g / b are zero in padded lanes -> padded lanes of the result are zero.
    return y * g + b


def gau_kernel(
    xq_ref,      # (Bblk, tq, Dp)  f32  q-side x tile (resident across k axis)
    xk_ref,      # (Bblk, tk, Dp)  f32  k/v-side x tile
    ln_g_ref,    # (1, Dp)  f32
    ln_b_ref,    # (1, Dp)  f32
    wv_ref,      # (Dp, Hp) bf16
    bv_ref,      # (1, Hp)  f32
    wg_ref,      # (Dp, Hp) bf16
    bg_ref,      # (1, Hp)  f32
    wqk_ref,     # (Dp, QKp) bf16
    bqk_ref,     # (1, QKp) f32
    gq_ref,      # (1, QKp) f32   OffsetScale gamma, q head
    bq_ref,      # (1, QKp) f32   OffsetScale beta,  q head
    gk_ref,      # (1, QKp) f32   OffsetScale gamma, k head
    bk_ref,      # (1, QKp) f32   OffsetScale beta,  k head
    wo_ref,      # (Hp, Dp) bf16
    bo_ref,      # (1, Dp)  f32
    o_ref,       # (Bblk, tq, Dp) f32
    acc_ref,     # (Bblk, tq, Hp) f32     running sum_k relu^2(q k^T) @ v
    q_s_ref,     # (Bblk, tq, QKp) bf16   q tile (scale folded in)
    nq_s_ref,    # (Bblk*tq, Dp)   bf16   layernormed q-side x (reused for gate)
    *,
    bblk, tq, tk, dp, hp, qkp, inv_seq, inv_d,
):
    ki = pl.program_id(2)
    n_k_steps = pl.num_programs(2)

    # ---- init: once per (batch-block, q-tile) -------------------------------
    @pl.when(ki == 0)
    def _():
        xq = xq_ref[...]
        nq = _layernorm(xq, ln_g_ref[...], ln_b_ref[...], inv_d)
        nq2 = nq.reshape(bblk * tq, dp)                  # f32, trivial reshape
        nq_bf = nq2.astype(jnp.bfloat16)
        nq_s_ref[...] = nq_bf
        qk_q = _silu(
            jnp.dot(nq_bf, wqk_ref[...],
                    preferred_element_type=jnp.float32) + bqk_ref[...])
        # OffsetScale (q head) + fold the 1/seq_len attention scale into q.
        q = (qk_q * gq_ref[...] + bq_ref[...]) * inv_seq
        q_s_ref[...] = q.reshape(bblk, tq, qkp).astype(jnp.bfloat16)
        acc_ref[...] = jnp.zeros_like(acc_ref)

    # ---- per k-tile: project k / v, accumulate ReLU^2 attention -------------
    xk = xk_ref[...]
    nrm_k = _layernorm(xk, ln_g_ref[...], ln_b_ref[...], inv_d)
    nk_bf = nrm_k.reshape(bblk * tk, dp).astype(jnp.bfloat16)

    v = _silu(jnp.dot(nk_bf, wv_ref[...],
                      preferred_element_type=jnp.float32) + bv_ref[...])
    qk_k = _silu(jnp.dot(nk_bf, wqk_ref[...],
                         preferred_element_type=jnp.float32) + bqk_ref[...])
    k = qk_k * gk_ref[...] + bk_ref[...]                 # OffsetScale (k head)
    k = k.reshape(bblk, tk, qkp).astype(jnp.bfloat16)
    v = v.reshape(bblk, tk, hp).astype(jnp.bfloat16)

    # sim = q @ k^T (batched, contracting QK) without materializing k.T
    sim = lax.dot_general(
        q_s_ref[...], k,
        dimension_numbers=(((2,), (2,)), ((0,), (0,))),
        preferred_element_type=jnp.float32)              # (Bblk, tq, tk) f32
    attn = jnp.maximum(sim, 0.0)
    attn = attn * attn                                   # ReLU^2 (scale folded)

    acc_ref[...] += lax.dot_general(
        attn.astype(jnp.bfloat16), v,
        dimension_numbers=(((2,), (1,)), ((0,), (0,))),
        preferred_element_type=jnp.float32)              # (Bblk, tq, Hp) f32

    # ---- finalize: gate, output projection, residual ------------------------
    @pl.when(ki == n_k_steps - 1)
    def _():
        gate = _silu(jnp.dot(nq_s_ref[...], wg_ref[...],
                             preferred_element_type=jnp.float32) + bg_ref[...])
        out = acc_ref[...].reshape(bblk * tq, hp) * gate
        out = jnp.dot(out.astype(jnp.bfloat16), wo_ref[...],
                      preferred_element_type=jnp.float32) + bo_ref[...]
        o_ref[...] = out.reshape(bblk, tq, dp) + xq_ref[...]


def _round_up(v, m):
    return ((v + m - 1) // m) * m


def _pick_seq_tile(n, target=256):
    """Largest multiple of 8 that divides n and is <= target; else n itself."""
    best = None
    t = 8
    while t <= min(n, target):
        if n % t == 0:
            best = t
        t += 8
    return best if best is not None else n


def _pick_batch_block(b, seq_tile, target_rows=512):
    """Largest divisor of b with bblk*seq_tile <= target_rows (>= 1)."""
    best = 1
    for d in range(1, b + 1):
        if b % d == 0 and d * seq_tile <= target_rows:
            best = d
    return best


def _pad_to(a, shape):
    pads = [(0, s - d) for d, s in zip(a.shape, shape)]
    if all(p == (0, 0) for p in pads):
        return a
    return jnp.pad(a, pads)


def gau_forward(x, params):
    """x: (B, N, D) float32. params: dict of weights (see init_params)."""
    B, N, D = x.shape
    H = params["wv"].shape[1]
    QK = params["wqk"].shape[1]

    Dp = _round_up(D, 128)
    Hp = _round_up(H, 128)
    QKp = _round_up(QK, 128)

    t = _pick_seq_tile(N)
    Bblk = _pick_batch_block(B, t)
    n_bb = B // Bblk
    n_t = N // t

    f32, bf16 = jnp.float32, jnp.bfloat16

    # Lane-dense padding (zeros) + bf16 weights for the MXU.
    xp = _pad_to(x.astype(f32), (B, N, Dp))
    ln_g = _pad_to(params["ln_g"].astype(f32), (1, Dp))
    ln_b = _pad_to(params["ln_b"].astype(f32), (1, Dp))
    wv = _pad_to(params["wv"], (Dp, Hp)).astype(bf16)
    bv = _pad_to(params["bv"].astype(f32), (1, Hp))
    wg = _pad_to(params["wg"], (Dp, Hp)).astype(bf16)
    bg = _pad_to(params["bg"].astype(f32), (1, Hp))
    wqk = _pad_to(params["wqk"], (Dp, QKp)).astype(bf16)
    bqk = _pad_to(params["bqk"].astype(f32), (1, QKp))
    gq = _pad_to(params["os_gamma"][0:1].astype(f32), (1, QKp))
    bq = _pad_to(params["os_beta"][0:1].astype(f32), (1, QKp))
    gk = _pad_to(params["os_gamma"][1:2].astype(f32), (1, QKp))
    bk = _pad_to(params["os_beta"][1:2].astype(f32), (1, QKp))
    wo = _pad_to(params["wo"], (Hp, Dp)).astype(bf16)
    bo = _pad_to(params["bo"].astype(f32), (1, Dp))

    kernel = functools.partial(
        gau_kernel,
        bblk=Bblk, tq=t, tk=t, dp=Dp, hp=Hp, qkp=QKp,
        inv_seq=1.0 / N,        # full sequence length, not the tile size
        inv_d=1.0 / D)          # real (unpadded) feature dim

    def _const(shape):
        nd = len(shape)
        return pl.BlockSpec(shape, lambda b, qi, ki: (0,) * nd)

    in_specs = [
        pl.BlockSpec((Bblk, t, Dp), lambda b, qi, ki: (b, qi, 0)),   # x (q side)
        pl.BlockSpec((Bblk, t, Dp), lambda b, qi, ki: (b, ki, 0)),   # x (k side)
        _const((1, Dp)), _const((1, Dp)),                            # ln g / b
        _const((Dp, Hp)), _const((1, Hp)),                           # wv, bv
        _const((Dp, Hp)), _const((1, Hp)),                           # wg, bg
        _const((Dp, QKp)), _const((1, QKp)),                         # wqk, bqk
        _const((1, QKp)), _const((1, QKp)),                          # gamma_q, beta_q
        _const((1, QKp)), _const((1, QKp)),                          # gamma_k, beta_k
        _const((Hp, Dp)), _const((1, Dp)),                           # wo, bo
    ]
    out_spec = pl.BlockSpec((Bblk, t, Dp), lambda b, qi, ki: (b, qi, 0))

    out_padded = pl.pallas_call(
        kernel,
        out_shape=jax.ShapeDtypeStruct((B, N, Dp), f32),
        grid_spec=pltpu.PrefetchScalarGridSpec(
            num_scalar_prefetch=0,
            grid=(n_bb, n_t, n_t),                 # reduction (k) axis last
            in_specs=in_specs,
            out_specs=out_spec,
            scratch_shapes=[
                pltpu.VMEM((Bblk, t, Hp), f32),    # attention accumulator
                pltpu.VMEM((Bblk, t, QKp), bf16),  # q tile (scaled)
                pltpu.VMEM((Bblk * t, Dp), bf16),  # layernormed q-side x
            ]),
        compiler_params=pltpu.CompilerParams(
            dimension_semantics=("parallel", "parallel", "arbitrary"),
            vmem_limit_bytes=48 * 1024 * 1024),
    )(
        xp, xp,
        ln_g, ln_b,
        wv, bv, wg, bg,
        wqk, bqk,
        gq, bq, gk, bk,
        wo, bo,
    )
    return out_padded[:, :, :D]


def gau_reference(x, params):
    """Pure-JAX f32 reference mirroring the PyTorch GAU.forward semantics."""
    n = x.shape[-2]
    mu = jnp.mean(x, axis=-1, keepdims=True)
    var = jnp.mean((x - mu) ** 2, axis=-1, keepdims=True)
    normed = (x - mu) * lax.rsqrt(var + 1e-5)
    normed = normed * params["ln_g"] + params["ln_b"]

    v = _silu(normed @ params["wv"] + params["bv"])
    gate = _silu(normed @ params["wg"] + params["bg"])
    qk = _silu(normed @ params["wqk"] + params["bqk"])

    q = qk * params["os_gamma"][0] + params["os_beta"][0]
    k = qk * params["os_gamma"][1] + params["os_beta"][1]

    sim = jnp.einsum("bid,bjd->bij", q, k)
    attn = jnp.maximum(sim / n, 0.0) ** 2
    out = jnp.einsum("bij,bjd->bid", attn, v) * gate
    out = out @ params["wo"] + params["bo"]
    return out + x


def init_params(key, dim, hidden_dim, query_key_dim):
    ks = jax.random.split(key, 12)
    return {
        # LayerNorm affine (slightly perturbed to exercise the affine path)
        "ln_g": 1.0 + 0.05 * jax.random.normal(ks[0], (1, dim), jnp.float32),
        "ln_b": 0.05 * jax.random.normal(ks[1], (1, dim), jnp.float32),
        # to_hidden Linear(dim, 2*hidden) split into v / gate halves
        "wv": 0.02 * jax.random.normal(ks[2], (dim, hidden_dim), jnp.float32),
        "bv": 0.02 * jax.random.normal(ks[3], (1, hidden_dim), jnp.float32),
        "wg": 0.02 * jax.random.normal(ks[4], (dim, hidden_dim), jnp.float32),
        "bg": 0.02 * jax.random.normal(ks[5], (1, hidden_dim), jnp.float32),
        # to_qk Linear(dim, query_key_dim)
        "wqk": 0.02 * jax.random.normal(ks[6], (dim, query_key_dim), jnp.float32),
        "bqk": 0.02 * jax.random.normal(ks[7], (1, query_key_dim), jnp.float32),
        # OffsetScale: gamma ~ N(0, 0.02) (matches nn.init.normal_ std=0.02)
        "os_gamma": 0.02 * jax.random.normal(ks[8], (2, query_key_dim), jnp.float32),
        "os_beta": 0.02 * jax.random.normal(ks[9], (2, query_key_dim), jnp.float32),
        # to_out Linear(hidden, dim)
        "wo": 0.02 * jax.random.normal(ks[10], (hidden_dim, dim), jnp.float32),
        "bo": 0.02 * jax.random.normal(ks[11], (1, dim), jnp.float32),
    }


if __name__ == "__main__":
    # Small shapes consistent with GAU(dim=32, query_key_dim=128, expansion_factor=2.0)
    B, N, DIM = 2, 8, 32
    QK = 128
    HIDDEN = int(2.0 * DIM)  # 64

    key = jax.random.PRNGKey(0)
    kx, kp = jax.random.split(key)
    x = jax.random.normal(kx, (B, N, DIM), jnp.float32)
    params = init_params(kp, DIM, HIDDEN, QK)

    out = jax.block_until_ready(gau_forward(x, params))
    ref = jax.block_until_ready(gau_reference(x, params))

    assert out.shape == (B, N, DIM)
    max_err = float(jnp.max(jnp.abs(out - ref)))
    assert jnp.allclose(out, ref, atol=1e-2, rtol=1e-2), (
        f"mismatch vs JAX reference, max abs err = {max_err}")
    print("KERNEL_OK")
</pallas_src>

<mosaic_0001>
module attributes {stable_mosaic.version = 11 : i64} {
  func.func @gau_kernel(%arg0: i32, %arg1: i32, %arg2: i32, %arg3: memref<2x8x128xf32, #tpu.memory_space<vmem>>, %arg4: memref<2x8x128xf32, #tpu.memory_space<vmem>>, %arg5: memref<1x128xf32, #tpu.memory_space<vmem>>, %arg6: memref<1x128xf32, #tpu.memory_space<vmem>>, %arg7: memref<128x128xbf16, #tpu.memory_space<vmem>>, %arg8: memref<1x128xf32, #tpu.memory_space<vmem>>, %arg9: memref<128x128xbf16, #tpu.memory_space<vmem>>, %arg10: memref<1x128xf32, #tpu.memory_space<vmem>>, %arg11: memref<128x128xbf16, #tpu.memory_space<vmem>>, %arg12: memref<1x128xf32, #tpu.memory_space<vmem>>, %arg13: memref<1x128xf32, #tpu.memory_space<vmem>>, %arg14: memref<1x128xf32, #tpu.memory_space<vmem>>, %arg15: memref<1x128xf32, #tpu.memory_space<vmem>>, %arg16: memref<1x128xf32, #tpu.memory_space<vmem>>, %arg17: memref<128x128xbf16, #tpu.memory_space<vmem>>, %arg18: memref<1x128xf32, #tpu.memory_space<vmem>>, %arg19: memref<2x8x128xf32, #tpu.memory_space<vmem>>, %arg20: memref<2x8x128xf32, #tpu.memory_space<vmem>>, %arg21: memref<2x8x128xbf16, #tpu.memory_space<vmem>>, %arg22: memref<16x128xbf16, #tpu.memory_space<vmem>>) attributes {dimension_semantics = [#tpu.dimension_semantics<parallel>, #tpu.dimension_semantics<parallel>, #tpu.dimension_semantics<arbitrary>], iteration_bounds = array<i64: 1, 1, 1>, scalar_prefetch = 0 : i64, scratch_operands = 3 : i64, tpu.core_type = #tpu.core_type<tc>, window_params = [{transform_indices = @transform_0, window_bounds = array<i64: 2, 8, 128>}, {transform_indices = @transform_1, window_bounds = array<i64: 2, 8, 128>}, {pipeline_mode = #tpu.pipeline_mode<synchronous>, transform_indices = @transform_2, window_bounds = array<i64: 1, 128>}, {pipeline_mode = #tpu.pipeline_mode<synchronous>, transform_indices = @transform_3, window_bounds = array<i64: 1, 128>}, {pipeline_mode = #tpu.pipeline_mode<synchronous>, transform_indices = @transform_4, window_bounds = array<i64: 128, 128>}, {pipeline_mode = #tpu.pipeline_mode<synchronous>, transform_indices = @transform_5, window_bounds = array<i64: 1, 128>}, {pipeline_mode = #tpu.pipeline_mode<synchronous>, transform_indices = @transform_6, window_bounds = array<i64: 128, 128>}, {pipeline_mode = #tpu.pipeline_mode<synchronous>, transform_indices = @transform_7, window_bounds = array<i64: 1, 128>}, {pipeline_mode = #tpu.pipeline_mode<synchronous>, transform_indices = @transform_8, window_bounds = array<i64: 128, 128>}, {pipeline_mode = #tpu.pipeline_mode<synchronous>, transform_indices = @transform_9, window_bounds = array<i64: 1, 128>}, {pipeline_mode = #tpu.pipeline_mode<synchronous>, transform_indices = @transform_10, window_bounds = array<i64: 1, 128>}, {pipeline_mode = #tpu.pipeline_mode<synchronous>, transform_indices = @transform_11, window_bounds = array<i64: 1, 128>}, {pipeline_mode = #tpu.pipeline_mode<synchronous>, transform_indices = @transform_12, window_bounds = array<i64: 1, 128>}, {pipeline_mode = #tpu.pipeline_mode<synchronous>, transform_indices = @transform_13, window_bounds = array<i64: 1, 128>}, {pipeline_mode = #tpu.pipeline_mode<synchronous>, transform_indices = @transform_14, window_bounds = array<i64: 128, 128>}, {pipeline_mode = #tpu.pipeline_mode<synchronous>, transform_indices = @transform_15, window_bounds = array<i64: 1, 128>}, {transform_indices = @transform_16, window_bounds = array<i64: 2, 8, 128>}]} {
    %c0_i32 = arith.constant 0 : i32
    %0 = arith.cmpi eq, %arg2, %c0_i32 : i32
    %1 = arith.extui %0 : i1 to i32
    %c0_i32_0 = arith.constant 0 : i32
    %2 = arith.cmpi ne, %1, %c0_i32_0 : i32
    scf.if %2 {
      %c0_42 = arith.constant 0 : index
      %c0_43 = arith.constant 0 : index
      %c0_44 = arith.constant 0 : index
      %79 = vector.load %arg3[%c0_42, %c0_43, %c0_44] : memref<2x8x128xf32, #tpu.memory_space<vmem>>, vector<2x8x128xf32>
      %c0_45 = arith.constant 0 : index
      %c0_46 = arith.constant 0 : index
      %80 = vector.load %arg5[%c0_45, %c0_46] : memref<1x128xf32, #tpu.memory_space<vmem>>, vector<1x128xf32>
      %c0_47 = arith.constant 0 : index
      %c0_48 = arith.constant 0 : index
      %81 = vector.load %arg6[%c0_47, %c0_48] : memref<1x128xf32, #tpu.memory_space<vmem>>, vector<1x128xf32>
      %cst_49 = arith.constant dense<0.000000e+00> : vector<2x8xf32>
      %82 = vector.multi_reduction <add>, %79, %cst_49 [2] : vector<2x8x128xf32> to vector<2x8xf32>
      %83 = vector.shape_cast %82 : vector<2x8xf32> to vector<2x8x1xf32>
      %cst_50 = arith.constant 3.125000e-02 : f32
      %84 = vector.broadcast %cst_50 : f32 to vector<2x8x1xf32>
      %85 = arith.mulf %83, %84 : vector<2x8x1xf32>
      %86 = arith.mulf %79, %79 : vector<2x8x128xf32>
      %cst_51 = arith.constant dense<0.000000e+00> : vector<2x8xf32>
      %87 = vector.multi_reduction <add>, %86, %cst_51 [2] : vector<2x8x128xf32> to vector<2x8xf32>
      %88 = vector.shape_cast %87 : vector<2x8xf32> to vector<2x8x1xf32>
      %cst_52 = arith.constant 3.125000e-02 : f32
      %89 = vector.broadcast %cst_52 : f32 to vector<2x8x1xf32>
      %90 = arith.mulf %88, %89 : vector<2x8x1xf32>
      %91 = arith.mulf %85, %85 : vector<2x8x1xf32>
      %92 = arith.subf %90, %91 : vector<2x8x1xf32>
      %cst_53 = arith.constant 0.000000e+00 : f32
      %93 = vector.broadcast %cst_53 : f32 to vector<2x8x1xf32>
      %94 = arith.maximumf %92, %93 : vector<2x8x1xf32>
      %95 = vector.broadcast %85 : vector<2x8x1xf32> to vector<2x8x128xf32>
      %96 = arith.subf %79, %95 : vector<2x8x128xf32>
      %cst_54 = arith.constant 9.99999974E-6 : f32
      %97 = vector.broadcast %cst_54 : f32 to vector<2x8x1xf32>
      %98 = arith.addf %94, %97 : vector<2x8x1xf32>
      %99 = math.rsqrt %98 : vector<2x8x1xf32>
      %100 = vector.broadcast %99 : vector<2x8x1xf32> to vector<2x8x128xf32>
      %101 = arith.mulf %96, %100 : vector<2x8x128xf32>
      %102 = vector.shape_cast %80 : vector<1x128xf32> to vector<1x1x128xf32>
      %103 = vector.broadcast %102 : vector<1x1x128xf32> to vector<2x8x128xf32>
      %104 = arith.mulf %101, %103 : vector<2x8x128xf32>
      %105 = vector.shape_cast %81 : vector<1x128xf32> to vector<1x1x128xf32>
      %106 = vector.broadcast %105 : vector<1x1x128xf32> to vector<2x8x128xf32>
      %107 = arith.addf %104, %106 : vector<2x8x128xf32>
      %108 = vector.shape_cast %107 : vector<2x8x128xf32> to vector<16x128xf32>
      %109 = arith.truncf %108 : vector<16x128xf32> to vector<16x128xbf16>
      %c0_55 = arith.constant 0 : index
      %c0_56 = arith.constant 0 : index
      %110 = vector.load %arg22[%c0_55, %c0_56] : memref<16x128xbf16, #tpu.memory_space<vmem>>, vector<16x128xbf16>
      tpu.vector_store %arg22[%c0_55, %c0_56], %109 {strides = array<i32>} : memref<16x128xbf16, #tpu.memory_space<vmem>>, vector<16x128xbf16>,
      %c0_57 = arith.constant 0 : index
      %c0_58 = arith.constant 0 : index
      %111 = vector.load %arg11[%c0_57, %c0_58] : memref<128x128xbf16, #tpu.memory_space<vmem>>, vector<128x128xbf16>
      %cst_59 = arith.constant dense<0.000000e+00> : vector<16x128xf32>
      %112 = tpu.matmul %109, %111, %cst_59 {dimension_numbers = #tpu.dot_dimension_numbers<[1], [0], [0], [1], [0, 0, 1, 1], [], []>} : vector<16x128xbf16>, vector<128x128xbf16>, vector<16x128xf32> -> vector<16x128xf32>
      %c0_60 = arith.constant 0 : index
      %c0_61 = arith.constant 0 : index
      %113 = vector.load %arg12[%c0_60, %c0_61] : memref<1x128xf32, #tpu.memory_space<vmem>>, vector<1x128xf32>
      %114 = vector.broadcast %113 : vector<1x128xf32> to vector<16x128xf32>
      %115 = arith.addf %112, %114 : vector<16x128xf32>
      %116 = arith.negf %115 : vector<16x128xf32>
      %117 = math.exp %116 : vector<16x128xf32>
      %cst_62 = arith.constant 1.000000e+00 : f32
      %118 = vector.broadcast %cst_62 : f32 to vector<16x128xf32>
      %119 = arith.addf %118, %117 : vector<16x128xf32>
      %120 = arith.divf %118, %119 : vector<16x128xf32>
      %121 = arith.mulf %115, %120 : vector<16x128xf32>
      %c0_63 = arith.constant 0 : index
      %c0_64 = arith.constant 0 : index
      %122 = vector.load %arg13[%c0_63, %c0_64] : memref<1x128xf32, #tpu.memory_space<vmem>>, vector<1x128xf32>
      %123 = vector.broadcast %122 : vector<1x128xf32> to vector<16x128xf32>
      %124 = arith.mulf %121, %123 : vector<16x128xf32>
      %c0_65 = arith.constant 0 : index
      %c0_66 = arith.constant 0 : index
      %125 = vector.load %arg14[%c0_65, %c0_66] : memref<1x128xf32, #tpu.memory_space<vmem>>, vector<1x128xf32>
      %126 = vector.broadcast %125 : vector<1x128xf32> to vector<16x128xf32>
      %127 = arith.addf %124, %126 : vector<16x128xf32>
      %cst_67 = arith.constant 1.250000e-01 : f32
      %128 = vector.broadcast %cst_67 : f32 to vector<16x128xf32>
      %129 = arith.mulf %127, %128 : vector<16x128xf32>
      %130 = vector.shape_cast %129 : vector<16x128xf32> to vector<2x8x128xf32>
      %131 = arith.truncf %130 : vector<2x8x128xf32> to vector<2x8x128xbf16>
      %c0_68 = arith.constant 0 : index
      %c0_69 = arith.constant 0 : index
      %c0_70 = arith.constant 0 : index
      %132 = vector.load %arg21[%c0_68, %c0_69, %c0_70] : memref<2x8x128xbf16, #tpu.memory_space<vmem>>, vector<2x8x128xbf16>
      tpu.vector_store %arg21[%c0_68, %c0_69, %c0_70], %131 {strides = array<i32>} : memref<2x8x128xbf16, #tpu.memory_space<vmem>>, vector<2x8x128xbf16>,
      %cst_71 = arith.constant 0.000000e+00 : f32
      %133 = vector.broadcast %cst_71 : f32 to vector<2x8x128xf32>
      %c0_72 = arith.constant 0 : index
      %c0_73 = arith.constant 0 : index
      %c0_74 = arith.constant 0 : index
      %134 = vector.load %arg20[%c0_72, %c0_73, %c0_74] : memref<2x8x128xf32, #tpu.memory_space<vmem>>, vector<2x8x128xf32>
      tpu.vector_store %arg20[%c0_72, %c0_73, %c0_74], %133 {strides = array<i32>} : memref<2x8x128xf32, #tpu.memory_space<vmem>>, vector<2x8x128xf32>,
    } else {
    }
    %c0 = arith.constant 0 : index
    %c0_1 = arith.constant 0 : index
    %c0_2 = arith.constant 0 : index
    %3 = vector.load %arg4[%c0, %c0_1, %c0_2] : memref<2x8x128xf32, #tpu.memory_space<vmem>>, vector<2x8x128xf32>
    %c0_3 = arith.constant 0 : index
    %c0_4 = arith.constant 0 : index
    %4 = vector.load %arg5[%c0_3, %c0_4] : memref<1x128xf32, #tpu.memory_space<vmem>>, vector<1x128xf32>
    %c0_5 = arith.constant 0 : index
    %c0_6 = arith.constant 0 : index
    %5 = vector.load %arg6[%c0_5, %c0_6] : memref<1x128xf32, #tpu.memory_space<vmem>>, vector<1x128xf32>
    %cst = arith.constant dense<0.000000e+00> : vector<2x8xf32>
    %6 = vector.multi_reduction <add>, %3, %cst [2] : vector<2x8x128xf32> to vector<2x8xf32>
    %7 = vector.shape_cast %6 : vector<2x8xf32> to vector<2x8x1xf32>
    %cst_7 = arith.constant 3.125000e-02 : f32
    %8 = vector.broadcast %cst_7 : f32 to vector<2x8x1xf32>
    %9 = arith.mulf %7, %8 : vector<2x8x1xf32>
    %10 = arith.mulf %3, %3 : vector<2x8x128xf32>
    %cst_8 = arith.constant dense<0.000000e+00> : vector<2x8xf32>
    %11 = vector.multi_reduction <add>, %10, %cst_8 [2] : vector<2x8x128xf32> to vector<2x8xf32>
    %12 = vector.shape_cast %11 : vector<2x8xf32> to vector<2x8x1xf32>
    %cst_9 = arith.constant 3.125000e-02 : f32
    %13 = vector.broadcast %cst_9 : f32 to vector<2x8x1xf32>
    %14 = arith.mulf %12, %13 : vector<2x8x1xf32>
    %15 = arith.mulf %9, %9 : vector<2x8x1xf32>
    %16 = arith.subf %14, %15 : vector<2x8x1xf32>
    %cst_10 = arith.constant 0.000000e+00 : f32
    %17 = vector.broadcast %cst_10 : f32 to vector<2x8x1xf32>
    %18 = arith.maximumf %16, %17 : vector<2x8x1xf32>
    %19 = vector.broadcast %9 : vector<2x8x1xf32> to vector<2x8x128xf32>
    %20 = arith.subf %3, %19 : vector<2x8x128xf32>
    %cst_11 = arith.constant 9.99999974E-6 : f32
    %21 = vector.broadcast %cst_11 : f32 to vector<2x8x1xf32>
    %22 = arith.addf %18, %21 : vector<2x8x1xf32>
    %23 = math.rsqrt %22 : vector<2x8x1xf32>
    %24 = vector.broadcast %23 : vector<2x8x1xf32> to vector<2x8x128xf32>
    %25 = arith.mulf %20, %24 : vector<2x8x128xf32>
    %26 = vector.shape_cast %4 : vector<1x128xf32> to vector<1x1x128xf32>
    %27 = vector.broadcast %26 : vector<1x1x128xf32> to vector<2x8x128xf32>
    %28 = arith.mulf %25, %27 : vector<2x8x128xf32>
    %29 = vector.shape_cast %5 : vector<1x128xf32> to vector<1x1x128xf32>
    %30 = vector.broadcast %29 : vector<1x1x128xf32> to vector<2x8x128xf32>
    %31 = arith.addf %28, %30 : vector<2x8x128xf32>
    %32 = vector.shape_cast %31 : vector<2x8x128xf32> to vector<16x128xf32>
    %33 = arith.truncf %32 : vector<16x128xf32> to vector<16x128xbf16>
    %c0_12 = arith.constant 0 : index
    %c0_13 = arith.constant 0 : index
    %34 = vector.load %arg7[%c0_12, %c0_13] : memref<128x128xbf16, #tpu.memory_space<vmem>>, vector<128x128xbf16>
    %cst_14 = arith.constant dense<0.000000e+00> : vector<16x128xf32>
    %35 = tpu.matmul %33, %34, %cst_14 {dimension_numbers = #tpu.dot_dimension_numbers<[1], [0], [0], [1], [0, 0, 1, 1], [], []>} : vector<16x128xbf16>, vector<128x128xbf16>, vector<16x128xf32> -> vector<16x128xf32>
    %c0_15 = arith.constant 0 : index
    %c0_16 = arith.constant 0 : index
    %36 = vector.load %arg8[%c0_15, %c0_16] : memref<1x128xf32, #tpu.memory_space<vmem>>, vector<1x128xf32>
    %37 = vector.broadcast %36 : vector<1x128xf32> to vector<16x128xf32>
    %38 = arith.addf %35, %37 : vector<16x128xf32>
    %39 = arith.negf %38 : vector<16x128xf32>
    %40 = math.exp %39 : vector<16x128xf32>
    %cst_17 = arith.constant 1.000000e+00 : f32
    %41 = vector.broadcast %cst_17 : f32 to vector<16x128xf32>
    %42 = arith.addf %41, %40 : vector<16x128xf32>
    %43 = arith.divf %41, %42 : vector<16x128xf32>
    %44 = arith.mulf %38, %43 : vector<16x128xf32>
    %c0_18 = arith.constant 0 : index
    %c0_19 = arith.constant 0 : index
    %45 = vector.load %arg11[%c0_18, %c0_19] : memref<128x128xbf16, #tpu.memory_space<vmem>>, vector<128x128xbf16>
    %cst_20 = arith.constant dense<0.000000e+00> : vector<16x128xf32>
    %46 = tpu.matmul %33, %45, %cst_20 {dimension_numbers = #tpu.dot_dimension_numbers<[1], [0], [0], [1], [0, 0, 1, 1], [], []>} : vector<16x128xbf16>, vector<128x128xbf16>, vector<16x128xf32> -> vector<16x128xf32>
    %c0_21 = arith.constant 0 : index
    %c0_22 = arith.constant 0 : index
    %47 = vector.load %arg12[%c0_21, %c0_22] : memref<1x128xf32, #tpu.memory_space<vmem>>, vector<1x128xf32>
    %48 = vector.broadcast %47 : vector<1x128xf32> to vector<16x128xf32>
    %49 = arith.addf %46, %48 : vector<16x128xf32>
    %50 = arith.negf %49 : vector<16x128xf32>
    %51 = math.exp %50 : vector<16x128xf32>
    %cst_23 = arith.constant 1.000000e+00 : f32
    %52 = vector.broadcast %cst_23 : f32 to vector<16x128xf32>
    %53 = arith.addf %52, %51 : vector<16x128xf32>
    %54 = arith.divf %52, %53 : vector<16x128xf32>
    %55 = arith.mulf %49, %54 : vector<16x128xf32>
    %c0_24 = arith.constant 0 : index
    %c0_25 = arith.constant 0 : index
    %56 = vector.load %arg15[%c0_24, %c0_25] : memref<1x128xf32, #tpu.memory_space<vmem>>, vector<1x128xf32>
    %57 = vector.broadcast %56 : vector<1x128xf32> to vector<16x128xf32>
    %58 = arith.mulf %55, %57 : vector<16x128xf32>
    %c0_26 = arith.constant 0 : index
    %c0_27 = arith.constant 0 : index
    %59 = vector.load %arg16[%c0_26, %c0_27] : memref<1x128xf32, #tpu.memory_space<vmem>>, vector<1x128xf32>
    %60 = vector.broadcast %59 : vector<1x128xf32> to vector<16x128xf32>
    %61 = arith.addf %58, %60 : vector<16x128xf32>
    %62 = vector.shape_cast %61 : vector<16x128xf32> to vector<2x8x128xf32>
    %63 = arith.truncf %62 : vector<2x8x128xf32> to vector<2x8x128xbf16>
    %64 = vector.shape_cast %44 : vector<16x128xf32> to vector<2x8x128xf32>
    %65 = arith.truncf %64 : vector<2x8x128xf32> to vector<2x8x128xbf16>
    %c0_28 = arith.constant 0 : index
    %c0_29 = arith.constant 0 : index
    %c0_30 = arith.constant 0 : index
    %66 = vector.load %arg21[%c0_28, %c0_29, %c0_30] : memref<2x8x128xbf16, #tpu.memory_space<vmem>>, vector<2x8x128xbf16>
    %cst_31 = arith.constant dense<0.000000e+00> : vector<2x8x8xf32>
    %67 = tpu.matmul %66, %63, %cst_31 {dimension_numbers = #tpu.dot_dimension_numbers<[2], [2], [1], [1], [0, 0, 0, 1, 1, 1], [0], [0]>} : vector<2x8x128xbf16>, vector<2x8x128xbf16>, vector<2x8x8xf32> -> vector<2x8x8xf32>
    %cst_32 = arith.constant 0.000000e+00 : f32
    %68 = vector.broadcast %cst_32 : f32 to vector<2x8x8xf32>
    %69 = arith.maximumf %67, %68 : vector<2x8x8xf32>
    %70 = arith.mulf %69, %69 : vector<2x8x8xf32>
    %c0_33 = arith.constant 0 : index
    %c0_34 = arith.constant 0 : index
    %c0_35 = arith.constant 0 : index
    %71 = vector.load %arg20[%c0_33, %c0_34, %c0_35] : memref<2x8x128xf32, #tpu.memory_space<vmem>>, vector<2x8x128xf32>
    %72 = arith.truncf %70 : vector<2x8x8xf32> to vector<2x8x8xbf16>
    %cst_36 = arith.constant dense<0.000000e+00> : vector<2x8x128xf32>
    %73 = tpu.matmul %72, %65, %cst_36 {dimension_numbers = #tpu.dot_dimension_numbers<[2], [1], [1], [2], [0, 0, 0, 1, 1, 2], [0], [0]>} : vector<2x8x8xbf16>, vector<2x8x128xbf16>, vector<2x8x128xf32> -> vector<2x8x128xf32>
    %74 = arith.addf %71, %73 : vector<2x8x128xf32>
    %c0_37 = arith.constant 0 : index
    %c0_38 = arith.constant 0 : index
    %c0_39 = arith.constant 0 : index
    %75 = vector.load %arg20[%c0_37, %c0_38, %c0_39] : memref<2x8x128xf32, #tpu.memory_space<vmem>>, vector<2x8x128xf32>
    tpu.vector_store %arg20[%c0_37, %c0_38, %c0_39], %74 {strides = array<i32>} : memref<2x8x128xf32, #tpu.memory_space<vmem>>, vector<2x8x128xf32>,
    %c0_i32_40 = arith.constant 0 : i32
    %76 = arith.cmpi eq, %arg2, %c0_i32_40 : i32
    %77 = arith.extui %76 : i1 to i32
    %c0_i32_41 = arith.constant 0 : i32
    %78 = arith.cmpi ne, %77, %c0_i32_41 : i32
    scf.if %78 {
      %c0_42 = arith.constant 0 : index
      %c0_43 = arith.constant 0 : index
      %79 = vector.load %arg22[%c0_42, %c0_43] : memref<16x128xbf16, #tpu.memory_space<vmem>>, vector<16x128xbf16>
      %c0_44 = arith.constant 0 : index
      %c0_45 = arith.constant 0 : index
      %80 = vector.load %arg9[%c0_44, %c0_45] : memref<128x128xbf16, #tpu.memory_space<vmem>>, vector<128x128xbf16>
      %cst_46 = arith.constant dense<0.000000e+00> : vector<16x128xf32>
      %81 = tpu.matmul %79, %80, %cst_46 {dimension_numbers = #tpu.dot_dimension_numbers<[1], [0], [0], [1], [0, 0, 1, 1], [], []>} : vector<16x128xbf16>, vector<128x128xbf16>, vector<16x128xf32> -> vector<16x128xf32>
      %c0_47 = arith.constant 0 : index
      %c0_48 = arith.constant 0 : index
      %82 = vector.load %arg10[%c0_47, %c0_48] : memref<1x128xf32, #tpu.memory_space<vmem>>, vector<1x128xf32>
      %83 = vector.broadcast %82 : vector<1x128xf32> to vector<16x128xf32>
      %84 = arith.addf %81, %83 : vector<16x128xf32>
      %85 = arith.negf %84 : vector<16x128xf32>
      %86 = math.exp %85 : vector<16x128xf32>
      %cst_49 = arith.constant 1.000000e+00 : f32
      %87 = vector.broadcast %cst_49 : f32 to vector<16x128xf32>
      %88 = arith.addf %87, %86 : vector<16x128xf32>
      %89 = arith.divf %87, %88 : vector<16x128xf32>
      %90 = arith.mulf %84, %89 : vector<16x128xf32>
      %c0_50 = arith.constant 0 : index
      %c0_51 = arith.constant 0 : index
      %c0_52 = arith.constant 0 : index
      %91 = vector.load %arg20[%c0_50, %c0_51, %c0_52] : memref<2x8x128xf32, #tpu.memory_space<vmem>>, vector<2x8x128xf32>
      %92 = vector.shape_cast %91 : vector<2x8x128xf32> to vector<16x128xf32>
      %93 = arith.mulf %92, %90 : vector<16x128xf32>
      %94 = arith.truncf %93 : vector<16x128xf32> to vector<16x128xbf16>
      %c0_53 = arith.constant 0 : index
      %c0_54 = arith.constant 0 : index
      %95 = vector.load %arg17[%c0_53, %c0_54] : memref<128x128xbf16, #tpu.memory_space<vmem>>, vector<128x128xbf16>
      %cst_55 = arith.constant dense<0.000000e+00> : vector<16x128xf32>
      %96 = tpu.matmul %94, %95, %cst_55 {dimension_numbers = #tpu.dot_dimension_numbers<[1], [0], [0], [1], [0, 0, 1, 1], [], []>} : vector<16x128xbf16>, vector<128x128xbf16>, vector<16x128xf32> -> vector<16x128xf32>
      %c0_56 = arith.constant 0 : index
      %c0_57 = arith.constant 0 : index
      %97 = vector.load %arg18[%c0_56, %c0_57] : memref<1x128xf32, #tpu.memory_space<vmem>>, vector<1x128xf32>
      %98 = vector.broadcast %97 : vector<1x128xf32> to vector<16x128xf32>
      %99 = arith.addf %96, %98 : vector<16x128xf32>
      %100 = vector.shape_cast %99 : vector<16x128xf32> to vector<2x8x128xf32>
      %c0_58 = arith.constant 0 : index
      %c0_59 = arith.constant 0 : index
      %c0_60 = arith.constant 0 : index
      %101 = vector.load %arg3[%c0_58, %c0_59, %c0_60] : memref<2x8x128xf32, #tpu.memory_space<vmem>>, vector<2x8x128xf32>
      %102 = arith.addf %100, %101 : vector<2x8x128xf32>
      %c0_61 = arith.constant 0 : index
      %c0_62 = arith.constant 0 : index
      %c0_63 = arith.constant 0 : index
      %103 = vector.load %arg19[%c0_61, %c0_62, %c0_63] : memref<2x8x128xf32, #tpu.memory_space<vmem>>, vector<2x8x128xf32>
      tpu.vector_store %arg19[%c0_61, %c0_62, %c0_63], %102 {strides = array<i32>} : memref<2x8x128xf32, #tpu.memory_space<vmem>>, vector<2x8x128xf32>,
    } else {
    }
    return
  }
  func.func @transform_0(%arg0: i32, %arg1: i32, %arg2: i32) -> (i32, i32, i32) {
    %c0_i32 = arith.constant 0 : i32
    %c0_i32_0 = arith.constant 0 : i32
    return %arg0, %arg1, %c0_i32 : i32, i32, i32
  }
  func.func @transform_1(%arg0: i32, %arg1: i32, %arg2: i32) -> (i32, i32, i32) {
    %c0_i32 = arith.constant 0 : i32
    %c0_i32_0 = arith.constant 0 : i32
    return %arg0, %arg2, %c0_i32 : i32, i32, i32
  }
  func.func @transform_2(%arg0: i32, %arg1: i32, %arg2: i32) -> (i32, i32) {
    %c0_i32 = arith.constant 0 : i32
    %c0_i32_0 = arith.constant 0 : i32
    %c0_i32_1 = arith.constant 0 : i32
    return %c0_i32, %c0_i32_0 : i32, i32
  }
  func.func @transform_3(%arg0: i32, %arg1: i32, %arg2: i32) -> (i32, i32) {
    %c0_i32 = arith.constant 0 : i32
    %c0_i32_0 = arith.constant 0 : i32
    %c0_i32_1 = arith.constant 0 : i32
    return %c0_i32, %c0_i32_0 : i32, i32
  }
  func.func @transform_4(%arg0: i32, %arg1: i32, %arg2: i32) -> (i32, i32) {
    %c0_i32 = arith.constant 0 : i32
    %c0_i32_0 = arith.constant 0 : i32
    %c0_i32_1 = arith.constant 0 : i32
    return %c0_i32, %c0_i32_0 : i32, i32
  }
  func.func @transform_5(%arg0: i32, %arg1: i32, %arg2: i32) -> (i32, i32) {
    %c0_i32 = arith.constant 0 : i32
    %c0_i32_0 = arith.constant 0 : i32
    %c0_i32_1 = arith.constant 0 : i32
    return %c0_i32, %c0_i32_0 : i32, i32
  }
  func.func @transform_6(%arg0: i32, %arg1: i32, %arg2: i32) -> (i32, i32) {
    %c0_i32 = arith.constant 0 : i32
    %c0_i32_0 = arith.constant 0 : i32
    %c0_i32_1 = arith.constant 0 : i32
    return %c0_i32, %c0_i32_0 : i32, i32
  }
  func.func @transform_7(%arg0: i32, %arg1: i32, %arg2: i32) -> (i32, i32) {
    %c0_i32 = arith.constant 0 : i32
    %c0_i32_0 = arith.constant 0 : i32
    %c0_i32_1 = arith.constant 0 : i32
    return %c0_i32, %c0_i32_0 : i32, i32
  }
  func.func @transform_8(%arg0: i32, %arg1: i32, %arg2: i32) -> (i32, i32) {
    %c0_i32 = arith.constant 0 : i32
    %c0_i32_0 = arith.constant 0 : i32
    %c0_i32_1 = arith.constant 0 : i32
    return %c0_i32, %c0_i32_0 : i32, i32
  }
  func.func @transform_9(%arg0: i32, %arg1: i32, %arg2: i32) -> (i32, i32) {
    %c0_i32 = arith.constant 0 : i32
    %c0_i32_0 = arith.constant 0 : i32
    %c0_i32_1 = arith.constant 0 : i32
    return %c0_i32, %c0_i32_0 : i32, i32
  }
  func.func @transform_10(%arg0: i32, %arg1: i32, %arg2: i32) -> (i32, i32) {
    %c0_i32 = arith.constant 0 : i32
    %c0_i32_0 = arith.constant 0 : i32
    %c0_i32_1 = arith.constant 0 : i32
    return %c0_i32, %c0_i32_0 : i32, i32
  }
  func.func @transform_11(%arg0: i32, %arg1: i32, %arg2: i32) -> (i32, i32) {
    %c0_i32 = arith.constant 0 : i32
    %c0_i32_0 = arith.constant 0 : i32
    %c0_i32_1 = arith.constant 0 : i32
    return %c0_i32, %c0_i32_0 : i32, i32
  }
  func.func @transform_12(%arg0: i32, %arg1: i32, %arg2: i32) -> (i32, i32) {
    %c0_i32 = arith.constant 0 : i32
    %c0_i32_0 = arith.constant 0 : i32
    %c0_i32_1 = arith.constant 0 : i32
    return %c0_i32, %c0_i32_0 : i32, i32
  }
  func.func @transform_13(%arg0: i32, %arg1: i32, %arg2: i32) -> (i32, i32) {
    %c0_i32 = arith.constant 0 : i32
    %c0_i32_0 = arith.constant 0 : i32
    %c0_i32_1 = arith.constant 0 : i32
    return %c0_i32, %c0_i32_0 : i32, i32
  }
  func.func @transform_14(%arg0: i32, %arg1: i32, %arg2: i32) -> (i32, i32) {
    %c0_i32 = arith.constant 0 : i32
    %c0_i32_0 = arith.constant 0 : i32
    %c0_i32_1 = arith.constant 0 : i32
    return %c0_i32, %c0_i32_0 : i32, i32
  }
  func.func @transform_15(%arg0: i32, %arg1: i32, %arg2: i32) -> (i32, i32) {
    %c0_i32 = arith.constant 0 : i32
    %c0_i32_0 = arith.constant 0 : i32
    %c0_i32_1 = arith.constant 0 : i32
    return %c0_i32, %c0_i32_0 : i32, i32
  }
  func.func @transform_16(%arg0: i32, %arg1: i32, %arg2: i32) -> (i32, i32, i32) {
    %c0_i32 = arith.constant 0 : i32
    %c0_i32_0 = arith.constant 0 : i32
    return %arg0, %arg1, %c0_i32 : i32, i32, i32
  }
}

</mosaic_0001>

<bundles_post_ra>
// kernel: tpu_custom_call.1
= control target key start
LH: loop header
LB: loop body
LE: loop exit
PB: predicated region body
PF: predicated region fallthrough
CT: control target
= control target key end

     0   :  { %s1958_s0 = inlined_call_operand.hbm [shape: f32[2,8,128], index: 0, kind: input, shape index: {}]   ;;  %s1959_s1 = inlined_call_operand.hbm [shape: f32[2,8,128], index: 1, kind: input, shape index: {}]   ;;  %s1960_s2 = inlined_call_operand.vmem [shape: f32[1,128], index: 2, kind: input, shape index: {}]   ;;  %s1961_s3 = inlined_call_operand.vmem [shape: f32[1,128], index: 3, kind: input, shape index: {}]   ;;  %s1962_s4 = inlined_call_operand.hbm [shape: bf16[128,128], index: 4, kind: input, shape index: {}]   ;;  %s1963_s5 = inlined_call_operand.vmem [shape: f32[1,128], index: 5, kind: input, shape index: {}]   ;;  %s1964_s6 = inlined_call_operand.hbm [shape: bf16[128,128], index: 6, kind: input, shape index: {}]   ;;  %s1965_s7 = inlined_call_operand.vmem [shape: f32[1,128], index: 7, kind: input, shape index: {}]   ;;  %s1966_s8 = inlined_call_operand.hbm [shape: bf16[128,128], index: 8, kind: input, shape index: {}]   ;;  %s1967_s9 = inlined_call_operand.vmem [shape: f32[1,128], index: 9, kind: input, shape index: {}]   ;;  %s1968_s10 = inlined_call_operand.vmem [shape: f32[1,128], index: 10, kind: input, shape index: {}]   ;;  %s1969_s11 = inlined_call_operand.vmem [shape: f32[1,128], index: 11, kind: input, shape index: {}]   ;;  %s1970_s12 = inlined_call_operand.vmem [shape: f32[1,128], index: 12, kind: input, shape index: {}]   ;;  %s1971_s13 = inlined_call_operand.vmem [shape: f32[1,128], index: 13, kind: input, shape index: {}]   ;;  %s1972_s14 = inlined_call_operand.hbm [shape: bf16[128,128], index: 14, kind: input, shape index: {}]   ;;  %s1973_s15 = inlined_call_operand.vmem [shape: f32[1,128], index: 15, kind: input, shape index: {}]   ;;  %s1974_s16 = inlined_call_operand.hbm [shape: f32[2,8,128], index: 16, kind: output, shape index: {}]  }
   0x1   :  { %1979 = sst [smem:[#allocation22_spill]] %s1958_s0 }
   0x2   :  { %1980 = sst [smem:[#allocation23_spill]] %s1974_s16 }
   0x3   :  { %21 = vsyncpa [#allocation6], 0 }
   0x4   :  { %22 = vsyncpa [#allocation9], 0 }
   0x5   :  { %23 = vsyncpa [#allocation12], 0 }
   0x6   :  { %24 = vsyncpa [#allocation15], 0 }
   0x7   :  { %25 = vsyncpa [#allocation7], 0  ;;  %s1629_s21 = smov [#allocation8]   ;;  %s1465_s25 = scalar_lea.hbm %s1959_s1, 256 }
   0x8   :  { %s43_s22 = sshll.u32 %s1629_s21, 4  ;;  %p1466_p0 = scmp.ne.s32.totalorder %s1959_s1, %s1465_s25  ;;  %s44_s22 = int_to_ptr.vmem [resolvable:$true] %s43_s22 }
   0x9   :  { %p1469_p1 = scmp.lt.u32.totalorder %s1465_s25, %s1959_s1 }
   0xb   :  { %p1471_p2 = pnand %p1469_p1, %p1466_p0 }
   0xd   :  { %1474 = shalt.err (!%p1471_p2)
}
   0xe   :  { %s1475_s30 = scalar_lea.vmem %s44_s22, 256  ;;  %p1480_p4 = scmp.lt.s32.totalorder %s44_s22, %s44_s22 }
   0xf   :  { %p1476_p3 = scmp.ne.s32.totalorder %s44_s22, %s1475_s30  ;;  %p1481_p5 = scmp.lt.s32.totalorder %s1475_s30, %s1475_s30 }
  0x11   :  { %p1482_p6 = por %p1481_p5, %p1480_p4 }
  0x13   :  { %p1483_p7 = pnand %p1482_p6, %p1476_p3 }
  0x15   :  { %1486 = shalt.err (!%p1483_p7)
}
  0x16   :  { %s1630_s0 = smov 128   ;;  %s1631_s17 = smov 8  }
  0x17   :  { %49 = dma.hbm_to_vmem [thread:$0]  %s1959_s1, 256, %s44_s22, [#allocation9], %s1630_s0, %s1630_s0, %s1631_s17  }
  0x18   :  { %s1632_s20 = smov [#allocation11]   ;;  %s1633_s23 = smov [#allocation5]  }
  0x19   :  { %s73_s21 = sshll.u32 %s1632_s20, 4  ;;  %s31_s24 = sshll.u32 %s1633_s23, 4  ;;  %s74_s21 = int_to_ptr.vmem [resolvable:$true] %s73_s21  ;;  %s32_s24 = int_to_ptr.vmem [resolvable:$true] %s31_s24 }
  0x1a   :  { %s1487_s27 = scalar_lea.hbm %s1964_s6, 1024 }
  0x1b   :  { %p1488_p8 = scmp.ne.s32.totalorder %s1964_s6, %s1487_s27  ;;  %p1491_p9 = scmp.lt.u32.totalorder %s1487_s27, %s1964_s6 }
  0x1d   :  { %p1493_p10 = pnand %p1491_p9, %p1488_p8 }
  0x1f   :  { %1496 = shalt.err (!%p1493_p10)
}
  0x20   :  { %s1497_s1 = scalar_lea.vmem %s74_s21, 1024  ;;  %p1502_p12 = scmp.lt.s32.totalorder %s74_s21, %s74_s21 }
  0x21   :  { %p1498_p11 = scmp.ne.s32.totalorder %s74_s21, %s1497_s1  ;;  %p1503_p13 = scmp.lt.s32.totalorder %s1497_s1, %s1497_s1 }
  0x23   :  { %p1504_p0 = por %p1503_p13, %p1502_p12 }
  0x25   :  { %p1505_p1 = pnand %p1504_p0, %p1498_p11 }
  0x27   :  { %1508 = shalt.err (!%p1505_p1)
}
  0x28   :  { %s1977_s22 = smov 64   ;;  %s1635_s18 = smov 4  }
  0x29   :  { %79 = dma.hbm_to_vmem [thread:$0]  %s1964_s6, 1024, %s74_s21, [#allocation12], %s1977_s22, %s1977_s22, %s1635_s18  }
  0x2a   :  { %s1981_s25 = sld [smem:[#allocation22_spill]] }
  0x30   :  { %s1509_s26 = scalar_lea.hbm %s1981_s25, 256 }
  0x31   :  { %p1510_p2 = scmp.ne.s32.totalorder %s1981_s25, %s1509_s26  ;;  %p1513_p3 = scmp.lt.u32.totalorder %s1509_s26, %s1981_s25 }
  0x33   :  { %p1515_p4 = pnand %p1513_p3, %p1510_p2 }
  0x35   :  { %1518 = shalt.err (!%p1515_p4)
}
  0x36   :  { %s1519_s1 = scalar_lea.vmem %s32_s24, 256  ;;  %p1524_p6 = scmp.lt.s32.totalorder %s32_s24, %s32_s24 }
  0x37   :  { %p1520_p5 = scmp.ne.s32.totalorder %s32_s24, %s1519_s1  ;;  %p1525_p7 = scmp.lt.s32.totalorder %s1519_s1, %s1519_s1 }
  0x39   :  { %p1526_p8 = por %p1525_p7, %p1524_p6 }
  0x3b   :  { %p1527_p9 = pnand %p1526_p8, %p1520_p5 }
  0x3d   :  { %1530 = shalt.err (!%p1527_p9)
}
  0x3e   :  { %37 = dma.hbm_to_vmem [thread:$0]  %s1981_s25, 256, %s32_s24, [#allocation6], %s1630_s0, %s1630_s0, %s1631_s17  }
  0x3f   :  { %s1636_s19 = smov [#allocation10]   ;;  %s1637_s16 = smov [#allocation13]  }
  0x40   :  { %s59_s20 = sshll.u32 %s1636_s19, 4  ;;  %s87_s23 = sshll.u32 %s1637_s16, 4  ;;  %s60_s20 = int_to_ptr.vmem [resolvable:$true] %s59_s20  ;;  %s88_s23 = int_to_ptr.vmem [resolvable:$true] %s87_s23 }
  0x41   :  { %s1531_s28 = scalar_lea.hbm %s1962_s4, 1024 }
  0x42   :  { %p1532_p10 = scmp.ne.s32.totalorder %s1962_s4, %s1531_s28  ;;  %p1535_p11 = scmp.lt.u32.totalorder %s1531_s28, %s1962_s4 }
  0x44   :  { %p1537_p12 = pnand %p1535_p11, %p1532_p10 }
  0x46   :  { %1540 = shalt.err (!%p1537_p12)
}
  0x47   :  { %s1541_s24 = scalar_lea.vmem %s60_s20, 1024  ;;  %p1546_p0 = scmp.lt.s32.totalorder %s60_s20, %s60_s20 }
  0x48   :  { %p1542_p13 = scmp.ne.s32.totalorder %s60_s20, %s1541_s24  ;;  %p1547_p1 = scmp.lt.s32.totalorder %s1541_s24, %s1541_s24 }
  0x4a   :  { %p1548_p2 = por %p1547_p1, %p1546_p0 }
  0x4c   :  { %p1549_p3 = pnand %p1548_p2, %p1542_p13 }
  0x4e   :  { %1552 = shalt.err (!%p1549_p3)
}
  0x4f   :  { %s1982_s25 = smov 64   ;;  %s1553_s16 = scalar_lea.hbm %s1966_s8, 1024 }
  0x50   :  { %65 = dma.hbm_to_vmem [thread:$0]  %s1962_s4, 1024, %s60_s20, [#allocation9], %s1982_s25, %s1982_s25, %s1635_s18  }
  0x51   :  { %p1554_p4 = scmp.ne.s32.totalorder %s1966_s8, %s1553_s16  ;;  %p1557_p5 = scmp.lt.u32.totalorder %s1553_s16, %s1966_s8 }
  0x53   :  { %p1559_p6 = pnand %p1557_p5, %p1554_p4 }
  0x55   :  { %1562 = shalt.err (!%p1559_p6)
}
  0x56   :  { %s1563_s30 = scalar_lea.vmem %s88_s23, 1024  ;;  %p1568_p8 = scmp.lt.s32.totalorder %s88_s23, %s88_s23 }
  0x57   :  { %p1564_p7 = scmp.ne.s32.totalorder %s88_s23, %s1563_s30  ;;  %p1569_p9 = scmp.lt.s32.totalorder %s1563_s30, %s1563_s30 }
  0x59   :  { %p1570_p10 = por %p1569_p9, %p1568_p8 }
  0x5b   :  { %p1571_p11 = pnand %p1570_p10, %p1564_p7 }
  0x5d   :  { %1574 = shalt.err (!%p1571_p11)
}
  0x5e   :  { %93 = dma.hbm_to_vmem [thread:$0]  %s1966_s8, 1024, %s88_s23, [#allocation12], %s1982_s25, %s1982_s25, %s1635_s18  }
  0x5f   :  { %s1638_s1 = smov [#allocation14]   ;;  %s1575_s19 = scalar_lea.hbm %s1972_s14, 1024 }
  0x60   :  { %s109_s24 = sshll.u32 %s1638_s1, 4  ;;  %p1576_p12 = scmp.ne.s32.totalorder %s1972_s14, %s1575_s19  ;;  %s110_s24 = int_to_ptr.vmem [resolvable:$true] %s109_s24 }
  0x61   :  { %p1579_p13 = scmp.lt.u32.totalorder %s1575_s19, %s1972_s14 }
  0x63   :  { %p1581_p0 = pnand %p1579_p13, %p1576_p12 }
  0x65   :  { %1584 = shalt.err (!%p1581_p0)
}
  0x66   :  { %s1585_s28 = scalar_lea.vmem %s110_s24, 1024  ;;  %p1590_p2 = scmp.lt.s32.totalorder %s110_s24, %s110_s24 }
  0x67   :  { %p1586_p1 = scmp.ne.s32.totalorder %s110_s24, %s1585_s28  ;;  %p1591_p3 = scmp.lt.s32.totalorder %s1585_s28, %s1585_s28 }
  0x69   :  { %p1592_p4 = por %p1591_p3, %p1590_p2 }
  0x6b   :  { %p1593_p5 = pnand %p1592_p4, %p1586_p1 }
  0x6d   :  { %1596 = shalt.err (!%p1593_p5)
}
  0x6e   :  { %115 = dma.hbm_to_vmem [thread:$0]  %s1972_s14, 1024, %s110_s24, [#allocation15], %s1982_s25, %s1982_s25, %s1635_s18  }
  0x6f   :  { %1619 = dma.done.wait [#allocation6], 256  }
  0x70   :  { %1620 = vsyncadd [#allocation6], 4294967040 }
  0x71   :  { %1621 = dma.done.wait [#allocation9], 1280  }
  0x72   :  { %1622 = vsyncadd [#allocation9], 4294966016 }
  0x73   :  { %1623 = dma.done.wait [#allocation12], 2048  }
  0x74   :  { %1624 = vsyncadd [#allocation12], 4294965248 }
  0x75   :  { %1625 = dma.done.wait [#allocation15], 1024  }
  0x76   :  { %1626 = vsyncadd [#allocation15], 4294966272  ;;  %v1817_v0 = vld [vmem:[#allocation5] sm:$0xff]  ;;  %v1819_v1 = vld [vmem:[#allocation5 + $0x8] sm:$0xff]  ;;  %v1639_v9 = vmov 0.0   ;;  %vm1640_vm0 = vmmov 0  }
  0x77   :  { %145 = vadd.xlane.f32.xlu0 %v1817_v0  ;;  %v151_v2 = vmul.f32 %v1817_v0, %v1817_v0  ;;  %v152_v3 = vmul.f32 %v1819_v1, %v1819_v1  ;;  %v1826_v4 = vld [vmem:[#allocation8] sm:$0xff]  ;;  %v1829_v5 = vld [vmem:[#allocation8 + $0x8] sm:$0xff]  ;;  %v1385_v8 = vld [vmem:[#allocation13] sm:$0xff]   ;;  %1248 = vmatprep.subr.bf16.mxu0 %v1639_v9  ;;  %vm760_vm1 = vcmask 1043456   ;;  %vm756_vm2 = vcmask 64512   ;;  %s1641_s19 = smov [#allocation16]  }
  0x78   :  { %v353_v6 = vmul.f32 %v1826_v4, %v1826_v4  ;;  %v354_v7 = vmul.f32 %v1829_v5, %v1829_v5  ;;  %1249 = vmatpush3.bf16.msra.mxu0 %v1385_v8  ;;  %1268 = vmatprep.subr.bf16.mxu1 %v1639_v9  ;;  %v1386_v10 = vld [vmem:[#allocation13 + $0x8] sm:$0xff]   ;;  %v1387_v11 = vld [vmem:[#allocation13 + $0x10] sm:$0xff]   ;;  %v1388_v12 = vld [vmem:[#allocation10] sm:$0xff]   ;;  %s1112_s22 = sshll.u32 %s1641_s19, 4  ;;  %s1113_s22 = int_to_ptr.vmem [resolvable:$true] %s1112_s22 }
  0x79   :  { %153 = vadd.xlane.f32.xlu1 %v151_v2  ;;  %1250 = vmatprep.subr.bf16.mxu0 %v1639_v9  ;;  %v1389_v13 = vld [vmem:[#allocation13 + $0x18] sm:$0xff]   ;;  %v1390_v14 = vld [vmem:[#allocation10 + $0x8] sm:$0xff]   ;;  %v1391_v15 = vld [vmem:[#allocation13 + $0x20] sm:$0xff]   ;;  %s1597_s16 = scalar_lea.vmem %s1113_s22, 256  ;;  %p1602_p7 = scmp.lt.s32.totalorder %s1113_s22, %s1113_s22 }
  0x7a   :  { %1269 = vmatpush3.bf16.msra.mxu1 %v1388_v12  ;;  %v1392_v16 = vld [vmem:[#allocation10 + $0x10] sm:$0xff]   ;;  %v1393_v17 = vld [vmem:[#allocation13 + $0x28] sm:$0xff]   ;;  %v1394_v18 = vld [vmem:[#allocation10 + $0x18] sm:$0xff]   ;;  %1264 = vmatprep.mubr.msk.bf16.mxu0 %vm1640_vm0, %v1639_v9  ;;  %p1598_p6 = scmp.ne.s32.totalorder %s1113_s22, %s1597_s16  ;;  %p1603_p8 = scmp.lt.s32.totalorder %s1597_s16, %s1597_s16 }
  0x7b   :  { %147 = vadd.xlane.f32.xlu0 %v1819_v1  ;;  %1270 = vmatprep.subr.bf16.mxu1 %v1639_v9  ;;  %v1395_v19 = vld [vmem:[#allocation13 + $0x30] sm:$0xff]   ;;  %v1396_v20 = vld [vmem:[#allocation10 + $0x20] sm:$0xff]   ;;  %v1397_v21 = vld [vmem:[#allocation13 + $0x38] sm:$0xff]  }
  0x7c   :  { %1251 = vmatpush3.bf16.msra.mxu0 %v1386_v10  ;;  %1284 = vmatprep.mubr.msk.bf16.mxu1 %vm1640_vm0, %v1639_v9  ;;  %v1398_v22 = vld [vmem:[#allocation10 + $0x28] sm:$0xff]   ;;  %v1400_v23 = vld [vmem:[#allocation10 + $0x30] sm:$0xff]   ;;  %v1402_v24 = vld [vmem:[#allocation10 + $0x38] sm:$0xff]   ;;  %p1604_p9 = por %p1603_p8, %p1602_p7 }
  0x7d   :  { %155 = vadd.xlane.f32.xlu1 %v152_v3  ;;  %1252 = vmatprep.subr.bf16.mxu0 %v1639_v9  ;;  %v1127_v60 = vld [vmem:[%s1960_s2] ss:$0 sm:$0xff] }
  0x7e   :  { %1271 = vmatpush3.bf16.msra.mxu1 %v1390_v14  ;;  %v1128_v3 = vld [vmem:[%s1961_s3] ss:$0 sm:$0xff]  ;;  %p1605_p10 = pnand %p1604_p9, %p1598_p6 }
  0x7f   :  { %347 = vadd.xlane.f32.xlu0 %v1826_v4  ;;  %1272 = vmatprep.subr.bf16.mxu1 %v1639_v9 }
  0x80   :  { %1253 = vmatpush3.bf16.msra.mxu0 %v1387_v11 }
  0x81   :  { %349 = vadd.xlane.f32.xlu1 %v1829_v5  ;;  %1254 = vmatprep.subr.bf16.mxu0 %v1639_v9 }
  0x82   :  { %1273 = vmatpush3.bf16.msra.mxu1 %v1392_v16 }
  0x83   :  { %355 = vadd.xlane.f32.xlu0 %v353_v6  ;;  %1274 = vmatprep.subr.bf16.mxu1 %v1639_v9 }
  0x84   :  { %1255 = vmatpush3.bf16.msra.mxu0 %v1389_v13  ;;  %v1399_v13 = vld [vmem:[#allocation13] sm:$0xff]  }
  0x85   :  { %357 = vadd.xlane.f32.xlu1 %v354_v7  ;;  %1256 = vmatprep.subr.bf16.mxu0 %v1639_v9 }
  0x86   :  { %1275 = vmatpush3.bf16.msra.mxu1 %v1394_v18 }
  0x87   :  { %1276 = vmatprep.subr.bf16.mxu1 %v1639_v9 }
  0x88   :  { %1257 = vmatpush3.bf16.msra.mxu0 %v1391_v15 }
  0x89   :  { %1258 = vmatprep.subr.bf16.mxu0 %v1639_v9 }
  0x8a   :  { %1277 = vmatpush3.bf16.msra.mxu1 %v1396_v20 }
  0x8b   :  { %1278 = vmatprep.subr.bf16.mxu1 %v1639_v9 }
  0x8c   :  { %1259 = vmatpush3.bf16.msra.mxu0 %v1393_v17 }
  0x8d   :  { %1260 = vmatprep.subr.bf16.mxu0 %v1639_v9 }
  0x8e   :  { %1279 = vmatpush3.bf16.msra.mxu1 %v1398_v22 }
  0x8f   :  { %1280 = vmatprep.subr.bf16.mxu1 %v1639_v9 }
  0x90   :  { %1261 = vmatpush3.bf16.msra.mxu0 %v1395_v19  ;;  %v1401_v19 = vld [vmem:[#allocation13 + $0x8] sm:$0xff]  }
  0x91   :  { %1262 = vmatprep.subr.bf16.mxu0 %v1639_v9 }
  0x92   :  { %1281 = vmatpush3.bf16.msra.mxu1 %v1400_v23  ;;  %v1404_v23 = vld [vmem:[#allocation13 + $0x18] sm:$0xff]  }
  0x93   :  { %1282 = vmatprep.subr.bf16.mxu1 %v1639_v9 }
  0x94   :  { %1263 = vmatpush3.bf16.msra.mxu0 %v1397_v21  ;;  %v1403_v21 = vld [vmem:[#allocation13 + $0x10] sm:$0xff]  }
  0x95   :  { %1288 = vmatprep.subr.bf16.mxu0 %v1639_v9 }
  0x96   :  { %1283 = vmatpush3.bf16.msra.mxu1 %v1402_v24  ;;  %v1405_v24 = vld [vmem:[#allocation13 + $0x20] sm:$0xff]  }
  0x97   :  { %1308 = vmatprep.subr.bf16.mxu1 %v1639_v9 }
 0x104   :  { %v146_v25 = vpop.xlane.xlu0 %145 }
 0x105   :  { %v149_v26 = vmul.f32 0.03125, %v146_v25  ;;  %v1406_v25 = vld [vmem:[#allocation13 + $0x28] sm:$0xff]  }
 0x106   :  { %v154_v27 = vpop.xlane.xlu1 %153 }
 0x107   :  { %v159_v28 = vmul.f32 %v149_v26, %v149_v26  ;;  %v157_v29 = vmul.f32 0.03125, %v154_v27  ;;  %v165_v56 = vsub.f32 %v1817_v0, %v149_v26  ;;  %v1407_v26 = vld [vmem:[#allocation13 + $0x30] sm:$0xff]   ;;  %v1408_v27 = vld [vmem:[#allocation13 + $0x38] sm:$0xff]  }
 0x108   :  { %v148_v30 = vpop.xlane.xlu0 %147 }
 0x109   :  { %v161_v31 = vsub.f32 %v157_v29, %v159_v28  ;;  %v150_v32 = vmul.f32 0.03125, %v148_v30  ;;  %v1409_v28 = vld [vmem:[#allocation11] sm:$0xff]   ;;  %v1410_v29 = vld [vmem:[#allocation11 + $0x8] sm:$0xff]   ;;  %v1411_v30 = vld [vmem:[#allocation11 + $0x10] sm:$0xff]  }
 0x10a   :  { %v156_v33 = vpop.xlane.xlu1 %155 }
 0x10b   :  { %v163_v34 = vmax.f32 %v161_v31, 0.0  ;;  %v160_v35 = vmul.f32 %v150_v32, %v150_v32  ;;  %v158_v36 = vmul.f32 0.03125, %v156_v33  ;;  %v166_v61 = vsub.f32 %v1819_v1, %v150_v32  ;;  %v1412_v31 = vld [vmem:[#allocation11 + $0x18] sm:$0xff]   ;;  %v1413_v32 = vld [vmem:[#allocation11 + $0x20] sm:$0xff]   ;;  %v1414_v33 = vld [vmem:[#allocation11 + $0x28] sm:$0xff]  }
 0x10c   :  { %v348_v37 = vpop.xlane.xlu0 %347 }
 0x10d   :  { %v167_v38 = vadd.f32 1e-05, %v163_v34  ;;  %v162_v39 = vsub.f32 %v158_v36, %v160_v35  ;;  %v351_v40 = vmul.f32 0.03125, %v348_v37  ;;  %v1415_v34 = vld [vmem:[#allocation11 + $0x30] sm:$0xff]   ;;  %v1416_v35 = vld [vmem:[#allocation11 + $0x38] sm:$0xff]  }
 0x10e   :  { %v350_v41 = vpop.xlane.xlu1 %349  ;;  %v1129_v36 = vld [vmem:[%s1967_s9] ss:$0 sm:$0xff] }
 0x10f   :  { %1425 = vrsqrt.f32 %v167_v38  ;;  %v164_v42 = vmax.f32 %v162_v39, 0.0  ;;  %v361_v43 = vmul.f32 %v351_v40, %v351_v40  ;;  %v352_v44 = vmul.f32 0.03125, %v350_v41 }
 0x110   :  { %v356_v45 = vpop.xlane.xlu0 %355  ;;  %v367_v6 = vsub.f32 %v1826_v4, %v351_v40 }
 0x111   :  { %v168_v46 = vadd.f32 1e-05, %v164_v42  ;;  %v359_v47 = vmul.f32 0.03125, %v356_v45  ;;  %v362_v48 = vmul.f32 %v352_v44, %v352_v44  ;;  %v368_v8 = vsub.f32 %v1829_v5, %v352_v44 }
 0x112   :  { %v358_v49 = vpop.xlane.xlu1 %357 }
 0x113   :  { %1427 = vrsqrt.f32 %v168_v46  ;;  %v363_v50 = vsub.f32 %v359_v47, %v361_v43  ;;  %v360_v51 = vmul.f32 0.03125, %v358_v49  ;;  %v1144_v47 = vld [vmem:[%s1963_s5] ss:$0 sm:$0xff] }
 0x115   :  { %v365_v52 = vmax.f32 %v363_v50, 0.0  ;;  %v364_v53 = vsub.f32 %v360_v51, %v362_v48 }
 0x117   :  { %v369_v54 = vadd.f32 1e-05, %v365_v52  ;;  %v366_v55 = vmax.f32 %v364_v53, 0.0 }
 0x119   :  { %v1426_v57 = vpop.eup %1425  ;;  %1429 = vrsqrt.f32 %v369_v54  ;;  %v370_v58 = vadd.f32 1e-05, %v366_v55 }
 0x11a   :  { %v171_v59 = vmul.f32 %v1426_v57, %v165_v56 }
 0x11b   :  { %1431 = vrsqrt.f32 %v370_v58 }
 0x11c   :  { %v179_v2 = vmul.f32 %v1127_v60, %v171_v59  ;;  %v1140_v59 = vld [vmem:[%s1968_s10] ss:$0 sm:$0xff] }
 0x11d   :  { %v1428_v62 = vpop.eup %1427 }
 0x11e   :  { %v172_v63 = vmul.f32 %v1428_v62, %v166_v61  ;;  %v187_v10 = vadd.f32 %v1128_v3, %v179_v2  ;;  %v1141_v62 = vld [vmem:[%s1969_s11] ss:$0 sm:$0xff] }
 0x120   :  { %v180_v7 = vmul.f32 %v1127_v60, %v172_v63 }
 0x122   :  { %v188_v11 = vadd.f32 %v1128_v3, %v180_v7 }
 0x123   :  { %v1430_v12 = vpop.eup %1429 }
 0x124   :  { %v189_v14 = vpack.c.bf16 %v188_v11, %v187_v10  ;;  %v373_v15 = vmul.f32 %v1430_v12, %v367_v6 }
 0x125   :  { %v1432_v16 = vpop.eup %1431 }
 0x126   :  { %1265 = vmatmul.mubr.bf16.vlgmr.msra.gmra.mrb[0].mxu0 %v189_v14  ;;  %v374_v17 = vmul.f32 %v1432_v16, %v368_v8  ;;  %v381_v18 = vmul.f32 %v1127_v60, %v373_v15 }
 0x127   :  { %1289 = vmatpush3.bf16.msra.mxu0 %v1399_v13  ;;  %1304 = vmatprep.mubr.msk.bf16.mxu0 %vm1640_vm0, %v1639_v9 }
 0x128   :  { %1290 = vmatprep.subr.bf16.mxu0 %v1639_v9  ;;  %v382_v4 = vmul.f32 %v1127_v60, %v374_v17  ;;  %v389_v20 = vadd.f32 %v1128_v3, %v381_v18 }
 0x12a   :  { %v390_v5 = vadd.f32 %v1128_v3, %v382_v4 }
 0x12b   :  { %1291 = vmatpush3.bf16.msra.mxu0 %v1401_v19 }
 0x12c   :  { %1292 = vmatprep.subr.bf16.mxu0 %v1639_v9  ;;  %v391_v22 = vpack.c.bf16 %v390_v5, %v389_v20 }
 0x12e   :  { %1285 = vmatmul.mubr.bf16.vlgmr.msra.gmra.mrb[0].mxu1 %v391_v22 }
 0x12f   :  { %1293 = vmatpush3.bf16.msra.mxu0 %v1403_v21  ;;  %1310 = vmatprep.mubr.msk.bf16.mxu1 %vm1640_vm0, %v1639_v9 }
 0x130   :  { %1294 = vmatprep.subr.bf16.mxu0 %v1639_v9 }
 0x133   :  { %1295 = vmatpush3.bf16.msra.mxu0 %v1404_v23 }
 0x134   :  { %1296 = vmatprep.subr.bf16.mxu0 %v1639_v9 }
 0x137   :  { %1297 = vmatpush3.bf16.msra.mxu0 %v1405_v24 }
 0x138   :  { %1298 = vmatprep.subr.bf16.mxu0 %v1639_v9 }
 0x13b   :  { %1299 = vmatpush3.bf16.msra.mxu0 %v1406_v25 }
 0x13c   :  { %1300 = vmatprep.subr.bf16.mxu0 %v1639_v9 }
 0x13f   :  { %1301 = vmatpush3.bf16.msra.mxu0 %v1407_v26 }
 0x140   :  { %1302 = vmatprep.subr.bf16.mxu0 %v1639_v9 }
 0x143   :  { %1303 = vmatpush3.bf16.msra.mxu0 %v1408_v27 }
 0x144   :  { %1332 = vmatprep.subr.bf16.mxu0 %v1639_v9 }
 0x146   :  { %1305 = vmatmul.mubr.bf16.vlgmr.msra.gmra.mrb[4].mxu0 %v391_v22 }
 0x147   :  { %1333 = vmatpush3.bf16.msra.mxu0 %v1409_v28  ;;  %1348 = vmatprep.mubr.msk.bf16.mxu0 %vm1640_vm0, %v1639_v9 }
 0x148   :  { %1334 = vmatprep.subr.bf16.mxu0 %v1639_v9 }
 0x14b   :  { %1335 = vmatpush3.bf16.msra.mxu0 %v1410_v29 }
 0x14c   :  { %1336 = vmatprep.subr.bf16.mxu0 %v1639_v9 }
 0x14f   :  { %1337 = vmatpush3.bf16.msra.mxu0 %v1411_v30 }
 0x150   :  { %1338 = vmatprep.subr.bf16.mxu0 %v1639_v9 }
 0x153   :  { %1339 = vmatpush3.bf16.msra.mxu0 %v1412_v31  ;;  %v1166_v31 = vld [vmem:[%s1970_s12] ss:$0 sm:$0xff] }
 0x154   :  { %1340 = vmatprep.subr.bf16.mxu0 %v1639_v9 }
 0x157   :  { %1341 = vmatpush3.bf16.msra.mxu0 %v1413_v32 }
 0x158   :  { %1342 = vmatprep.subr.bf16.mxu0 %v1639_v9 }
 0x15b   :  { %1343 = vmatpush3.bf16.msra.mxu0 %v1414_v33 }
 0x15c   :  { %1344 = vmatprep.subr.bf16.mxu0 %v1639_v9 }
 0x15f   :  { %1345 = vmatpush3.bf16.msra.mxu0 %v1415_v34  ;;  %v1167_v34 = vld [vmem:[%s1971_s13] ss:$0 sm:$0xff] }
 0x160   :  { %1346 = vmatprep.subr.bf16.mxu0 %v1639_v9 }
 0x163   :  { %1347 = vmatpush3.bf16.msra.mxu0 %v1416_v35 }
 0x166   :  { %1349 = vmatmul.mubr.bf16.vlgmr.msra.gmra.mrb[8].mxu0 %v189_v14 }
 0x1f9   :  { %v296_v37 = vpop.f32.mrb[0].mxu0 }
 0x1fa   :  { %v297_v38 = vadd.f32 %v1129_v36, %v296_v37  ;;  %v1266_v39 = vpop.f32.mrb[1].mxu0 }
 0x1fb   :  { %v299_v40 = vpop.f32.mrb[2].mxu0 }
 0x1fc   :  { %v1138_v41 = vmul.f32 -1.442695, %v297_v38  ;;  %v300_v42 = vadd.f32 %v1129_v36, %v299_v40  ;;  %v1267_v43 = vpop.f32.mrb[3].mxu0 }
 0x1fe   :  { %1433 = vpow2.f32 %v1138_v41  ;;  %v1139_v44 = vmul.f32 -1.442695, %v300_v42 }
 0x200   :  { %1435 = vpow2.f32 %v1139_v44 }
 0x201   :  { %v497_v45 = vpop.f32.mrb[0].mxu1 }
 0x202   :  { %v1286_v46 = vpop.f32.mrb[1].mxu1  ;;  %v498_v4 = vadd.f32 %v1144_v47, %v497_v45 }
 0x203   :  { %v500_v48 = vpop.f32.mrb[2].mxu1 }
 0x204   :  { %v501_v49 = vadd.f32 %v1144_v47, %v500_v48  ;;  %v1287_v50 = vpop.f32.mrb[3].mxu1  ;;  %v1153_v22 = vmul.f32 -1.442695, %v498_v4 }
 0x206   :  { %v1154_v51 = vmul.f32 -1.442695, %v501_v49 }
 0x208   :  { %v1434_v52 = vpop.eup %1433  ;;  %1437 = vpow2.f32 %v1154_v51 }
 0x209   :  { %v309_v53 = vadd.f32 1.0, %v1434_v52 }
 0x20a   :  { %v1436_v54 = vpop.eup %1435 }
 0x20b   :  { %1439 = vrcp.f32 %v309_v53  ;;  %v310_v55 = vadd.f32 1.0, %v1436_v54 }
 0x20d   :  { %1441 = vrcp.f32 %v310_v55 }
 0x212   :  { %v1438_v56 = vpop.eup %1437 }
 0x213   :  { %v511_v57 = vadd.f32 1.0, %v1438_v56 }
 0x215   :  { %v1440_v58 = vpop.eup %1439  ;;  %1443 = vrcp.f32 %v511_v57 }
 0x216   :  { %v315_v60 = vmul.f32 %v1440_v58, %v297_v38 }
 0x217   :  { %v1442_v61 = vpop.eup %1441 }
 0x218   :  { %v324_v63 = vmul.f32 %v1140_v59, %v315_v60  ;;  %v316_v2 = vmul.f32 %v1442_v61, %v300_v42 }
 0x219   :  { %v623_v3 = vpop.f32.mrb[4].mxu0 }
 0x21a   :  { %v333_v6 = vadd.f32 %v1141_v62, %v324_v63  ;;  %v325_v7 = vmul.f32 %v1140_v59, %v316_v2  ;;  %v624_v8 = vadd.f32 %v1129_v36, %v623_v3  ;;  %v1306_v10 = vpop.f32.mrb[5].mxu0  ;;  %v1417_v3 = vld [vmem:[#allocation14] sm:$0xff]  }
 0x21b   :  { %v626_v11 = vpop.f32.mrb[6].mxu0  ;;  %v1420_v10 = vld [vmem:[#allocation14 + $0x18] sm:$0xff]  }
 0x21c   :  { %v334_v12 = vadd.f32 %v1141_v62, %v325_v7  ;;  %v1164_v13 = vmul.f32 -1.442695, %v624_v8  ;;  %v627_v14 = vadd.f32 %v1129_v36, %v626_v11  ;;  %v1307_v15 = vpop.f32.mrb[7].mxu0  ;;  %v335_v16 = vmul.f32 0.125, %v333_v6  ;;  %v1418_v7 = vld [vmem:[#allocation14 + $0x8] sm:$0xff]   ;;  %v1421_v11 = vld [vmem:[#allocation14 + $0x20] sm:$0xff]  }
 0x21d   :  { %v1170_v15 = vld [vmem:[%s1965_s7] ss:$0 sm:$0xff] }
 0x21e   :  { %v336_v17 = vmul.f32 0.125, %v334_v12  ;;  %1445 = vpow2.f32 %v1164_v13  ;;  %v1165_v18 = vmul.f32 -1.442695, %v627_v14  ;;  %v1422_v12 = vld [vmem:[#allocation14 + $0x28] sm:$0xff]   ;;  %v1423_v13 = vld [vmem:[#allocation14 + $0x30] sm:$0xff]  }
 0x21f   :  { %v1444_v19 = vpop.eup %1443 }
 0x220   :  { %v1193_v20 = vpack.c.bf16 %v336_v17, %v335_v16  ;;  %v517_v5 = vmul.f32 %v1444_v19, %v501_v49  ;;  %1447 = vpow2.f32 %v1165_v18 }
 0x221   :  { %1449 = vpow2.f32 %v1153_v22 }
 0x222   :  { %1194 = vst [vmem:[#allocation3] sm:$0xff] %v1193_v20   ;;  %v665_v21 = vpack.c.bf16 %v517_v5, %v517_v5 }
 0x224   :  { %v808_v23 = vsel %vm760_vm1, %v665_v21, 0 }
 0x228   :  { %v1446_v24 = vpop.eup %1445 }
 0x229   :  { %v636_v25 = vadd.f32 1.0, %v1446_v24  ;;  %v666_v47 = vld [vmem:[#allocation3] sm:$0xf]  ;;  %v667_v50 = vld [vmem:[#allocation3 + $0x4] sm:$0xf] }
 0x22a   :  { %v1448_v26 = vpop.eup %1447 }
 0x22b   :  { %1451 = vrcp.f32 %v636_v25  ;;  %v637_v27 = vadd.f32 1.0, %v1448_v26  ;;  %v1450_v28 = vpop.eup %1449 }
 0x22c   :  { %v510_v29 = vadd.f32 1.0, %v1450_v28 }
 0x22d   :  { %1453 = vrcp.f32 %v637_v27 }
 0x22e   :  { %1455 = vrcp.f32 %v510_v29 }
 0x235   :  { %v1452_v30 = vpop.eup %1451 }
 0x236   :  { %v642_v32 = vmul.f32 %v1452_v30, %v624_v8  ;;  %v1419_v8 = vld [vmem:[#allocation14 + $0x10] sm:$0xff]  }
 0x237   :  { %v1454_v33 = vpop.eup %1453 }
 0x238   :  { %v651_v35 = vmul.f32 %v1166_v31, %v642_v32  ;;  %v643_v36 = vmul.f32 %v1454_v33, %v627_v14  ;;  %v1456_v45 = vpop.eup %1455  ;;  %v1424_v14 = vld [vmem:[#allocation14 + $0x38] sm:$0xff]  }
 0x239   :  { %v1909_v37 = vpop.f32.mrb[8].mxu0  ;;  %v516_v48 = vmul.f32 %v1456_v45, %v498_v4 }
 0x23a   :  { %v660_v38 = vadd.f32 %v1167_v34, %v651_v35  ;;  %v1350_v39 = vpop.f32.mrb[9].mxu0  ;;  %v652_v42 = vmul.f32 %v1166_v31, %v643_v36  ;;  %v964_v16 = vadd.f32 %v1170_v15, %v1909_v37  ;;  %v1181_v36 = vld [vmem:[%s1973_s15] ss:$0 sm:$0xff] }
 0x23b   :  { %v1911_v40 = vpop.f32.mrb[10].mxu0  ;;  %v664_v49 = vpack.c.bf16 %v516_v48, %v516_v48 }
 0x23c   :  { %v662_v41 = vpack.c.bf16 %v660_v38, %v660_v38  ;;  %v1351_v43 = vpop.f32.mrb[11].mxu0  ;;  %v661_v44 = vadd.f32 %v1167_v34, %v652_v42  ;;  %v1179_v17 = vmul.f32 -1.442695, %v964_v16  ;;  %v967_v18 = vadd.f32 %v1170_v15, %v1911_v40 }
 0x23d   :  { %v762_v51 = vsel %vm760_vm1, %v664_v49, 0 }
 0x23e   :  { %1309 = vmatpush3.bf16.xpose.msra.mxu1 %v662_v41  ;;  %v663_v46 = vpack.c.bf16 %v661_v44, %v661_v44  ;;  %1457 = vpow2.f32 %v1179_v17  ;;  %v1180_v19 = vmul.f32 -1.442695, %v967_v18 }
 0x23f   :  { %1314 = vmatprep.subr.bf16.mxu1 %v1639_v9 }
 0x240   :  { %1459 = vpow2.f32 %v1180_v19 }
 0x245   :  { %1311 = vmatmul.mubr.bf16.vlgmr.msra.gmra.mrb[4].mxu1 %v666_v47 }
 0x246   :  { %1315 = vmatpush3.bf16.xpose.msra.mxu1 %v663_v46  ;;  %1316 = vmatprep.mubr.msk.bf16.mxu1 %vm1640_vm0, %v1639_v9 }
 0x247   :  { %1320 = vmatprep.subr.bf16.mxu1 %v1639_v9 }
 0x248   :  { %v1458_v4 = vpop.eup %1457 }
 0x249   :  { %v976_v20 = vadd.f32 1.0, %v1458_v4 }
 0x24a   :  { %v1460_v5 = vpop.eup %1459 }
 0x24b   :  { %1461 = vrcp.f32 %v976_v20  ;;  %v977_v21 = vadd.f32 1.0, %v1460_v5 }
 0x24d   :  { %1317 = vmatmul.mubr.bf16.vlgmr.msra.gmra.mrb[8].mxu1 %v667_v50  ;;  %1463 = vrcp.f32 %v977_v21 }
 0x24e   :  { %1321 = vmatpush3.bf16.msra.mxu1 %v762_v51  ;;  %1322 = vmatprep.mubr.msk.bf16.mxu1 %vm1640_vm0, %v1639_v9 }
 0x24f   :  { %1326 = vmatprep.subr.bf16.mxu1 %v1639_v9 }
 0x318   :  { %v702_v52 = vpop.f32.mrb[4].mxu1 }
 0x319   :  { %v748_v53 = vmax.f32 %v702_v52, 0.0  ;;  %v1312_v54 = vpop.f32.mrb[5].mxu1 }
 0x31a   :  { %v705_v55 = vpop.f32.mrb[6].mxu1 }
 0x31b   :  { %v750_v56 = vmul.f32 %v748_v53, %v748_v53  ;;  %v1313_v57 = vpop.f32.mrb[7].mxu1 }
 0x31d   :  { %v754_v58 = vpack.c.bf16 %v750_v56, %v750_v56 }
 0x31f   :  { %1323 = vmatmul.mubr.msk.bf16.vlgmr.msra.gmra.mrb[12].mxu1 %vm756_vm2, %v754_v58 }
 0x320   :  { %1327 = vmatpush3.bf16.msra.mxu1 %v808_v23  ;;  %v742_v59 = vpop.f32.mrb[8].mxu1  ;;  %1328 = vmatprep.mubr.msk.bf16.mxu1 %vm1640_vm0, %v1639_v9 }
 0x321   :  { %v749_v60 = vmax.f32 %v742_v59, 0.0  ;;  %v1318_v61 = vpop.f32.mrb[9].mxu1  ;;  %1352 = vmatprep.subr.bf16.mxu1 %v1639_v9 }
 0x322   :  { %v745_v62 = vpop.f32.mrb[10].mxu1 }
 0x323   :  { %v751_v63 = vmul.f32 %v749_v60, %v749_v60  ;;  %v1319_v2 = vpop.f32.mrb[11].mxu1 }
 0x325   :  { %v755_v6 = vpack.c.bf16 %v751_v63, %v751_v63 }
 0x327   :  { %1329 = vmatmul.mubr.msk.bf16.vlgmr.msra.gmra.mrb[16].mxu1 %vm756_vm2, %v755_v6 }
 0x328   :  { %1353 = vmatpush3.bf16.msra.mxu1 %v1417_v3  ;;  %1368 = vmatprep.mubr.msk.bf16.mxu1 %vm1640_vm0, %v1639_v9 }
 0x329   :  { %1354 = vmatprep.subr.bf16.mxu1 %v1639_v9 }
 0x32c   :  { %1355 = vmatpush3.bf16.msra.mxu1 %v1418_v7 }
 0x32d   :  { %1356 = vmatprep.subr.bf16.mxu1 %v1639_v9 }
 0x330   :  { %1357 = vmatpush3.bf16.msra.mxu1 %v1419_v8 }
 0x331   :  { %1358 = vmatprep.subr.bf16.mxu1 %v1639_v9 }
 0x334   :  { %1359 = vmatpush3.bf16.msra.mxu1 %v1420_v10 }
 0x335   :  { %1360 = vmatprep.subr.bf16.mxu1 %v1639_v9 }
 0x338   :  { %1361 = vmatpush3.bf16.msra.mxu1 %v1421_v11 }
 0x339   :  { %1362 = vmatprep.subr.bf16.mxu1 %v1639_v9 }
 0x33c   :  { %1363 = vmatpush3.bf16.msra.mxu1 %v1422_v12 }
 0x33d   :  { %1364 = vmatprep.subr.bf16.mxu1 %v1639_v9 }
 0x340   :  { %1365 = vmatpush3.bf16.msra.mxu1 %v1423_v13 }
 0x341   :  { %1366 = vmatprep.subr.bf16.mxu1 %v1639_v9  ;;  %v1462_v9 = vpop.eup %1461 }
 0x342   :  { %v982_v22 = vmul.f32 %v1462_v9, %v964_v16  ;;  %v1464_v28 = vpop.eup %1463 }
 0x343   :  { %v983_v29 = vmul.f32 %v1464_v28, %v967_v18 }
 0x344   :  { %1367 = vmatpush3.bf16.msra.mxu1 %v1424_v14 }
 0x3f2   :  { %v798_v23 = vpop.f32.mrb[12].mxu1 }
 0x3f3   :  { %v986_v24 = vmul.f32 %v982_v22, %v798_v23  ;;  %v1324_v25 = vpop.f32.mrb[13].mxu1 }
 0x3f4   :  { %v801_v26 = vpop.f32.mrb[14].mxu1 }
 0x3f5   :  { %v1325_v27 = vpop.f32.mrb[15].mxu1 }
 0x3fa   :  { %v844_v30 = vpop.f32.mrb[16].mxu1 }
 0x3fb   :  { %v987_v31 = vmul.f32 %v983_v29, %v844_v30  ;;  %v1330_v32 = vpop.f32.mrb[17].mxu1 }
 0x3fc   :  { %v847_v33 = vpop.f32.mrb[18].mxu1 }
 0x3fd   :  { %v988_v34 = vpack.c.bf16 %v987_v31, %v986_v24  ;;  %v1331_v35 = vpop.f32.mrb[19].mxu1 }
 0x3ff   :  { %1369 = vmatmul.mubr.bf16.vlgmr.msra.gmra.mrb[20].mxu1 %v988_v34 }
 0x4d2   :  { %v1094_v37 = vpop.f32.mrb[20].mxu1 }
 0x4d3   :  { %v1095_v38 = vadd.f32 %v1181_v36, %v1094_v37  ;;  %v1370_v39 = vpop.f32.mrb[21].mxu1 }
 0x4d4   :  { %v1097_v40 = vpop.f32.mrb[22].mxu1 }
 0x4d5   :  { %v1103_v41 = vadd.f32 %v1095_v38, %v1817_v0  ;;  %v1098_v42 = vadd.f32 %v1181_v36, %v1097_v40  ;;  %v1371_v43 = vpop.f32.mrb[23].mxu1 }
 0x4d7   :  { %1105 = vst [vmem:[#allocation16] sm:$0xff] %v1103_v41  ;;  %v1104_v44 = vadd.f32 %v1098_v42, %v1819_v1 }
 0x4d9   :  { %1106 = vst [vmem:[#allocation16 + $0x8] sm:$0xff] %v1104_v44 }
 0x4da   :  { %1608 = shalt.err (!%p1605_p10)
}
 0x4db   :  { %s1983_s27 = sld [smem:[#allocation23_spill]] }
 0x4e1   :  { %s1609_s28 = scalar_lea.hbm %s1983_s27, 256 }
 0x4e2   :  { %p1610_p11 = scmp.ne.s32.totalorder %s1983_s27, %s1609_s28  ;;  %p1613_p12 = scmp.lt.u32.totalorder %s1609_s28, %s1983_s27 }
 0x4e4   :  { %p1615_p13 = pnand %p1613_p12, %p1610_p11 }
 0x4e6   :  { %1618 = shalt.err (!%p1615_p13)
}
 0x4e7   :  { %1118 = dma.vmem_to_hbm [thread:$0]  %s1113_s22, 256, %s1983_s27, [#allocation7], %s1630_s0, %s1630_s0, %s1631_s17  }
 0x4e8   :  { %1627 = dma.done.wait [#allocation7], 256  }
 0x4e9   :  { %1628 = vsyncadd [#allocation7], 4294967040 }
 0x4ea   :  { %1122 = vsyncpa [#allocation6], 1 }
 0x4eb   :  { %1123 = vsyncpa [#allocation9], 1 }
 0x4ec   :  { %1124 = vsyncpa [#allocation12], 1 }
 0x4ed   :  { %1125 = vsyncpa [#allocation15], 1 }
 0x4ee   :  { %1126 = vsyncpa [#allocation7], 1 }

</bundles_post_ra>
